<compile_context>
chip_gen: v6e
topology: v6e:2x2x1
jax: 0.10.0
libtpu: 0.0.40
codegen_flags: <defaults>
</compile_context>

<pallas_src>
import functools

import jax
import jax.numpy as jnp
from jax.experimental import pallas as pl
from jax.experimental.pallas import tpu as pltpu

IN_FEA = 64
H_FEA = 32
OUT_FEA = 1
NEG_SLOPE = 0.01   # torch.nn.LeakyReLU default
PACK = 4           # 4 rows x 32 hidden features = 128 lanes (one full vreg row)


def _leaky_relu(x):
    # max(x, a*x) == LeakyReLU(x) for 0 < a < 1; cheaper than where(cmp, ...).
    return jnp.maximum(x, NEG_SLOPE * x)


def mlp_kernel(x_ref, w1_ref, b1_ref, w2_ref, b2_ref, w3_ref, b3_ref, o_ref):
    # x_ref: (tm_p, PACK*IN_FEA) -- PACK original rows packed per lane-dense row.
    x = x_ref[...].astype(w1_ref.dtype)      # optional in-VMEM cast, no HBM pass
    # Layer 1: (tm_p, 256) @ (256, 128) block-diagonal weights, f32 accumulate.
    h = jnp.dot(x, w1_ref[...], preferred_element_type=jnp.float32)
    h = _leaky_relu(h + b1_ref[...])
    # Layer 2: (tm_p, 128) @ (128, 128) block-diagonal weights.
    h = jnp.dot(h.astype(w2_ref.dtype), w2_ref[...],
                preferred_element_type=jnp.float32)
    h = _leaky_relu(h + b2_ref[...])
    # Output layer: 128-wide selection matrix whose first PACK columns hold the
    # block-diagonal copies of w3 (rest zero) -> keeps the matmul MXU-native,
    # then slice the PACK useful columns.
    out = jnp.dot(h.astype(w3_ref.dtype), w3_ref[...],
                  preferred_element_type=jnp.float32)          # (tm_p, 128)
    o_ref[...] = (out[:, :PACK] + b3_ref[...]).astype(o_ref.dtype)   # (tm_p, 4)


def _round_up(v, m):
    return ((v + m - 1) // m) * m


def _block_diag(w, copies):
    k, m = w.shape
    out = jnp.zeros((copies * k, copies * m), w.dtype)
    for j in range(copies):
        out = out.at[j * k:(j + 1) * k, j * m:(j + 1) * m].set(w)
    return out


def mlp_reference(x, params):
    """True f32 reference matching the PyTorch module (HIGHEST-precision dots)."""
    w1, b1, w2, b2, w3, b3 = params
    hi = jax.lax.Precision.HIGHEST
    h = jnp.dot(x, w1, precision=hi) + b1.reshape(1, -1)
    h = _leaky_relu(h)
    h = jnp.dot(h, w2, precision=hi) + b2.reshape(1, -1)
    h = _leaky_relu(h)
    return jnp.dot(h, w3, precision=hi) + b3.reshape(1, -1)


def mlp_forward(x, params, *, tm=8192, compute_dtype=jnp.float32):
    """x: [N, 64] float32 -> [N, 1] float32.

    tm: row tile in *original* rows. Default 8192 (2 MiB f32 x-tile / buffer).
    compute_dtype: matmul operand dtype. float32 (default) for strict parity
    with the PyTorch module; bfloat16 halves MXU/VALU work on v6e/v7x and is
    cast *inside* the kernel, so it adds no HBM traffic.
    """
    n, d = x.shape
    assert d == IN_FEA
    w1, b1, w2, b2, w3, b3 = params

    n_main = (n // PACK) * PACK
    pieces = []

    if n_main > 0:
        np_rows = n_main // PACK   # packed rows of 256 features

        # Packed row tile: multiple of 8 sublanes, big enough to amortize the
        # per-grid-step overhead, small enough for v5e's 16 MiB scoped VMEM.
        tm_p = max(8, (tm // PACK) // 8 * 8)
        if tm_p >= np_rows:
            if np_rows >= 16:
                # Keep >= 2 grid steps so both v7x TensorCores get work.
                tm_p = _round_up(pl.cdiv(np_rows, 2), 8)
            else:
                tm_p = np_rows          # single block == full array dim
        grid = (pl.cdiv(np_rows, tm_p),)

        # (N, 64) -> (N/4, 256): contiguous row-major reshape, no HBM copy.
        xp = x[:n_main].reshape(np_rows, PACK * IN_FEA)

        # Tiny host-side packed parameters (built once per call).
        w1bd = _block_diag(w1, PACK).astype(compute_dtype)          # (256, 128)
        w2bd = _block_diag(w2, PACK).astype(compute_dtype)          # (128, 128)
        w3sel = jnp.zeros((PACK * H_FEA, PACK * H_FEA), compute_dtype)
        w3sel = w3sel.at[:, :PACK].set(
            _block_diag(w3, PACK).astype(compute_dtype))            # (128, 128)
        b1t = jnp.tile(b1.reshape(1, H_FEA), (1, PACK)).astype(jnp.float32)
        b2t = jnp.tile(b2.reshape(1, H_FEA), (1, PACK)).astype(jnp.float32)
        b3t = jnp.tile(b3.reshape(1, OUT_FEA), (1, PACK)).astype(jnp.float32)

        full = lambda shape: pl.BlockSpec(shape, lambda i: (0,) * len(shape))
        out_p = pl.pallas_call(
            mlp_kernel,
            out_shape=jax.ShapeDtypeStruct((np_rows, PACK), jnp.float32),
            grid_spec=pltpu.PrefetchScalarGridSpec(
                num_scalar_prefetch=0,
                grid=grid,
                in_specs=[
                    pl.BlockSpec((tm_p, PACK * IN_FEA), lambda i: (i, 0)),  # x
                    full((PACK * IN_FEA, PACK * H_FEA)),   # w1 block-diag (resident)
                    full((1, PACK * H_FEA)),               # b1 tiled
                    full((PACK * H_FEA, PACK * H_FEA)),    # w2 block-diag
                    full((1, PACK * H_FEA)),               # b2 tiled
                    full((PACK * H_FEA, PACK * H_FEA)),    # w3 selection matrix
                    full((1, PACK)),                       # b3 tiled
                ],
                out_specs=pl.BlockSpec((tm_p, PACK), lambda i: (i, 0)),
            ),
            compiler_params=pltpu.CompilerParams(
                dimension_semantics=("parallel",)),
        )(xp, w1bd, b1t, w2bd, b2t, w3sel, b3t)
        # (N/4, 4) -> (N, 1): contiguous row-major reshape, free.
        pieces.append(out_p.reshape(n_main, OUT_FEA))

    if n_main < n:
        # <= 3 leftover rows (N % 4): plain f32 math, no full-array pad copy.
        pieces.append(mlp_reference(x[n_main:], params))

    return pieces[0] if len(pieces) == 1 else jnp.concatenate(pieces, axis=0)


def init_params(key):
    """Deterministic init matching nn.Linear's default U(-1/sqrt(fan_in), +...)."""
    def linear(key, fan_in, fan_out):
        kw, kb = jax.random.split(key)
        bound = 1.0 / jnp.sqrt(fan_in)
        # stored as [in, out] (transpose of PyTorch weight [out, in])
        w = jax.random.uniform(kw, (fan_in, fan_out), jnp.float32, -bound, bound)
        b = jax.random.uniform(kb, (1, fan_out), jnp.float32, -bound, bound)
        return w, b

    k1, k2, k3 = jax.random.split(key, 3)
    w1, b1 = linear(k1, IN_FEA, H_FEA)
    w2, b2 = linear(k2, H_FEA, H_FEA)
    w3, b3 = linear(k3, H_FEA, OUT_FEA)
    return (w1, b1, w2, b2, w3, b3)


if __name__ == "__main__":
    key = jax.random.PRNGKey(0)
    kp, kx = jax.random.split(key)
    params = init_params(kp)

    run = jax.jit(functools.partial(mlp_forward, params=params))

    # Small shapes covering: single-block path, multi-step grid with a partial
    # last block, and a ragged N % 4 tail.
    for batch in (16, 250, 1003):
        x = jax.random.normal(jax.random.fold_in(kx, batch),
                              (batch, IN_FEA), jnp.float32)
        out = jax.block_until_ready(run(x))
        ref = mlp_reference(x, params)
        assert out.shape == (batch, OUT_FEA)
        err = float(jnp.max(jnp.abs(out - ref)))
        assert jnp.allclose(out, ref, atol=5e-4, rtol=5e-4), err

    print("KERNEL_OK")
</pallas_src>

<mosaic_0001>
module attributes {stable_mosaic.version = 11 : i64} {
  func.func @mlp_kernel(%arg0: i32, %arg1: memref<4x256xf32, #tpu.memory_space<vmem>>, %arg2: memref<256x128xf32, #tpu.memory_space<vmem>>, %arg3: memref<1x128xf32, #tpu.memory_space<vmem>>, %arg4: memref<128x128xf32, #tpu.memory_space<vmem>>, %arg5: memref<1x128xf32, #tpu.memory_space<vmem>>, %arg6: memref<128x128xf32, #tpu.memory_space<vmem>>, %arg7: memref<1x4xf32, #tpu.memory_space<vmem>>, %arg8: memref<4x4xf32, #tpu.memory_space<vmem>>) attributes {dimension_semantics = [#tpu.dimension_semantics<parallel>], iteration_bounds = array<i64: 1>, scalar_prefetch = 0 : i64, scratch_operands = 0 : i64, tpu.core_type = #tpu.core_type<tc>, window_params = [{transform_indices = @transform_0, window_bounds = array<i64: 4, 256>}, {pipeline_mode = #tpu.pipeline_mode<synchronous>, transform_indices = @transform_1, window_bounds = array<i64: 256, 128>}, {pipeline_mode = #tpu.pipeline_mode<synchronous>, transform_indices = @transform_2, window_bounds = array<i64: 1, 128>}, {pipeline_mode = #tpu.pipeline_mode<synchronous>, transform_indices = @transform_3, window_bounds = array<i64: 128, 128>}, {pipeline_mode = #tpu.pipeline_mode<synchronous>, transform_indices = @transform_4, window_bounds = array<i64: 1, 128>}, {pipeline_mode = #tpu.pipeline_mode<synchronous>, transform_indices = @transform_5, window_bounds = array<i64: 128, 128>}, {pipeline_mode = #tpu.pipeline_mode<synchronous>, transform_indices = @transform_6, window_bounds = array<i64: 1, 4>}, {transform_indices = @transform_7, window_bounds = array<i64: 4, 4>}]} {
    %c0 = arith.constant 0 : index
    %c0_0 = arith.constant 0 : index
    %0 = vector.load %arg1[%c0, %c0_0] : memref<4x256xf32, #tpu.memory_space<vmem>>, vector<4x256xf32>
    %c0_1 = arith.constant 0 : index
    %c0_2 = arith.constant 0 : index
    %1 = vector.load %arg2[%c0_1, %c0_2] : memref<256x128xf32, #tpu.memory_space<vmem>>, vector<256x128xf32>
    %cst = arith.constant dense<0.000000e+00> : vector<4x128xf32>
    %2 = tpu.matmul %0, %1, %cst {dimension_numbers = #tpu.dot_dimension_numbers<[1], [0], [0], [1], [0, 0, 1, 1], [], []>} : vector<4x256xf32>, vector<256x128xf32>, vector<4x128xf32> -> vector<4x128xf32>
    %c0_3 = arith.constant 0 : index
    %c0_4 = arith.constant 0 : index
    %3 = vector.load %arg3[%c0_3, %c0_4] : memref<1x128xf32, #tpu.memory_space<vmem>>, vector<1x128xf32>
    %4 = vector.broadcast %3 : vector<1x128xf32> to vector<4x128xf32>
    %5 = arith.addf %2, %4 : vector<4x128xf32>
    %cst_5 = arith.constant 0.00999999977 : f32
    %6 = vector.broadcast %cst_5 : f32 to vector<4x128xf32>
    %7 = arith.mulf %6, %5 : vector<4x128xf32>
    %8 = arith.maximumf %5, %7 : vector<4x128xf32>
    %c0_6 = arith.constant 0 : index
    %c0_7 = arith.constant 0 : index
    %9 = vector.load %arg4[%c0_6, %c0_7] : memref<128x128xf32, #tpu.memory_space<vmem>>, vector<128x128xf32>
    %cst_8 = arith.constant dense<0.000000e+00> : vector<4x128xf32>
    %10 = tpu.matmul %8, %9, %cst_8 {dimension_numbers = #tpu.dot_dimension_numbers<[1], [0], [0], [1], [0, 0, 1, 1], [], []>} : vector<4x128xf32>, vector<128x128xf32>, vector<4x128xf32> -> vector<4x128xf32>
    %c0_9 = arith.constant 0 : index
    %c0_10 = arith.constant 0 : index
    %11 = vector.load %arg5[%c0_9, %c0_10] : memref<1x128xf32, #tpu.memory_space<vmem>>, vector<1x128xf32>
    %12 = vector.broadcast %11 : vector<1x128xf32> to vector<4x128xf32>
    %13 = arith.addf %10, %12 : vector<4x128xf32>
    %cst_11 = arith.constant 0.00999999977 : f32
    %14 = vector.broadcast %cst_11 : f32 to vector<4x128xf32>
    %15 = arith.mulf %14, %13 : vector<4x128xf32>
    %16 = arith.maximumf %13, %15 : vector<4x128xf32>
    %c0_12 = arith.constant 0 : index
    %c0_13 = arith.constant 0 : index
    %17 = vector.load %arg6[%c0_12, %c0_13] : memref<128x128xf32, #tpu.memory_space<vmem>>, vector<128x128xf32>
    %cst_14 = arith.constant dense<0.000000e+00> : vector<4x128xf32>
    %18 = tpu.matmul %16, %17, %cst_14 {dimension_numbers = #tpu.dot_dimension_numbers<[1], [0], [0], [1], [0, 0, 1, 1], [], []>} : vector<4x128xf32>, vector<128x128xf32>, vector<4x128xf32> -> vector<4x128xf32>
    %19 = vector.extract_strided_slice %18 {offsets = [0, 0], sizes = [4, 4], strides = [1, 1]} : vector<4x128xf32> to vector<4x4xf32>
    %c0_15 = arith.constant 0 : index
    %c0_16 = arith.constant 0 : index
    %20 = vector.load %arg7[%c0_15, %c0_16] : memref<1x4xf32, #tpu.memory_space<vmem>>, vector<1x4xf32>
    %21 = vector.broadcast %20 : vector<1x4xf32> to vector<4x4xf32>
    %22 = arith.addf %19, %21 : vector<4x4xf32>
    %c0_17 = arith.constant 0 : index
    %c0_18 = arith.constant 0 : index
    %23 = vector.load %arg8[%c0_17, %c0_18] : memref<4x4xf32, #tpu.memory_space<vmem>>, vector<4x4xf32>
    tpu.vector_store %arg8[%c0_17, %c0_18], %22 {strides = array<i32>} : memref<4x4xf32, #tpu.memory_space<vmem>>, vector<4x4xf32>,
    return
  }
  func.func @transform_0(%arg0: i32) -> (i32, i32) {
    %c0_i32 = arith.constant 0 : i32
    %c0_i32_0 = arith.constant 0 : i32
    return %arg0, %c0_i32 : i32, i32
  }
  func.func @transform_1(%arg0: i32) -> (i32, i32) {
    %c0_i32 = arith.constant 0 : i32
    %c0_i32_0 = arith.constant 0 : i32
    %c0_i32_1 = arith.constant 0 : i32
    return %c0_i32, %c0_i32_0 : i32, i32
  }
  func.func @transform_2(%arg0: i32) -> (i32, i32) {
    %c0_i32 = arith.constant 0 : i32
    %c0_i32_0 = arith.constant 0 : i32
    %c0_i32_1 = arith.constant 0 : i32
    return %c0_i32, %c0_i32_0 : i32, i32
  }
  func.func @transform_3(%arg0: i32) -> (i32, i32) {
    %c0_i32 = arith.constant 0 : i32
    %c0_i32_0 = arith.constant 0 : i32
    %c0_i32_1 = arith.constant 0 : i32
    return %c0_i32, %c0_i32_0 : i32, i32
  }
  func.func @transform_4(%arg0: i32) -> (i32, i32) {
    %c0_i32 = arith.constant 0 : i32
    %c0_i32_0 = arith.constant 0 : i32
    %c0_i32_1 = arith.constant 0 : i32
    return %c0_i32, %c0_i32_0 : i32, i32
  }
  func.func @transform_5(%arg0: i32) -> (i32, i32) {
    %c0_i32 = arith.constant 0 : i32
    %c0_i32_0 = arith.constant 0 : i32
    %c0_i32_1 = arith.constant 0 : i32
    return %c0_i32, %c0_i32_0 : i32, i32
  }
  func.func @transform_6(%arg0: i32) -> (i32, i32) {
    %c0_i32 = arith.constant 0 : i32
    %c0_i32_0 = arith.constant 0 : i32
    %c0_i32_1 = arith.constant 0 : i32
    return %c0_i32, %c0_i32_0 : i32, i32
  }
  func.func @transform_7(%arg0: i32) -> (i32, i32) {
    %c0_i32 = arith.constant 0 : i32
    %c0_i32_0 = arith.constant 0 : i32
    return %arg0, %c0_i32 : i32, i32
  }
}

</mosaic_0001>

<bundles_post_ra>
// kernel: mlp_forward.1
= control target key start
LH: loop header
LB: loop body
LE: loop exit
PB: predicated region body
PF: predicated region fallthrough
CT: control target
= control target key end

     0   :  { %v481_v3 = vmov 0.0   ;;  %vm482_vm0 = vmmov 0   ;;  %vm330_vm1 = vcmask 27648   ;;  %s769_s1 = inlined_call_operand.vmem [shape: f32[256,128], index: 1, kind: input, shape index: {}]   ;;  %s770_s0 = inlined_call_operand.vmem [shape: f32[4,256], index: 0, kind: input, shape index: {}]   ;;  %s771_s3 = inlined_call_operand.vmem [shape: f32[128,128], index: 3, kind: input, shape index: {}]   ;;  %s772_s5 = inlined_call_operand.vmem [shape: f32[128,128], index: 5, kind: input, shape index: {}]   ;;  %s773_s2 = inlined_call_operand.vmem [shape: f32[1,128], index: 2, kind: input, shape index: {}]   ;;  %s774_s4 = inlined_call_operand.vmem [shape: f32[1,128], index: 4, kind: input, shape index: {}]   ;;  %s775_s6 = inlined_call_operand.vmem [shape: f32[1,4], index: 6, kind: input, shape index: {}]   ;;  %s776_s7 = inlined_call_operand.vmem [shape: f32[4,4], index: 7, kind: output, shape index: {}]  }
   0x1   :  { %v58_v0 = vld [vmem:[%s769_s1 + $0xf8] sm:$0xff]  ;;  %v57_v2 = vld [vmem:[%s769_s1 + $0xf0] sm:$0xff]  ;;  %408 = vmatprep.subr.mxu1 %v481_v3  ;;  %v56_v5 = vld [vmem:[%s769_s1 + $0xe8] sm:$0xff]  ;;  %440 = vmatprep.mubr.msk.f32.mxu1 %vm482_vm0, %v481_v3 }
   0x2   :  { %v42_v1 = vld [vmem:[%s769_s1 + $0x78] sm:$0xff]  ;;  %339 = vmatprep.subr.mxu0 %v58_v0  ;;  %v41_v4 = vld [vmem:[%s769_s1 + $0x70] sm:$0xff]  ;;  %v40_v6 = vld [vmem:[%s769_s1 + $0x68] sm:$0xff] }
   0x3   :  { %340 = vmatpush3.msra.mxu0 %v42_v1  ;;  %v55_v7 = vld [vmem:[%s769_s1 + $0xe0] sm:$0xff]  ;;  %v54_v9 = vld [vmem:[%s769_s1 + $0xd8] sm:$0xff]  ;;  %v53_v11 = vld [vmem:[%s769_s1 + $0xd0] sm:$0xff] }
   0x4   :  { %341 = vmatprep.subr.mxu0 %v57_v2  ;;  %v39_v8 = vld [vmem:[%s769_s1 + $0x60] sm:$0xff]  ;;  %v38_v10 = vld [vmem:[%s769_s1 + $0x58] sm:$0xff]  ;;  %v37_v12 = vld [vmem:[%s769_s1 + $0x50] sm:$0xff] }
   0x5   :  { %342 = vmatpush3.msra.mxu0 %v41_v4  ;;  %v52_v13 = vld [vmem:[%s769_s1 + $0xc8] sm:$0xff]  ;;  %v566_v14 = vld [vmem:[%s770_s0] sm:$0xff]  ;;  %v156_v17 = vld [vmem:[%s771_s3 + $0x78] sm:$0xff] }
   0x6   :  { %343 = vmatprep.subr.mxu0 %v56_v5  ;;  %v36_v15 = vld [vmem:[%s769_s1 + $0x48] sm:$0xff]  ;;  %v67_v16 = vcombine.high %v566_v14, %v566_v14  ;;  %v51_v18 = vld [vmem:[%s769_s1 + $0xc0] sm:$0xff]  ;;  %409 = vmatpush3.msra.mxu1 %v156_v17  ;;  %v155_v19 = vld [vmem:[%s771_s3 + $0x70] sm:$0xff] }
   0x7   :  { %344 = vmatpush3.msra.mxu0 %v40_v6  ;;  %v35_v20 = vld [vmem:[%s769_s1 + $0x40] sm:$0xff]  ;;  %v50_v21 = vld [vmem:[%s769_s1 + $0xb8] sm:$0xff]  ;;  %410 = vmatprep.subr.mxu1 %v481_v3  ;;  %v154_v22 = vld [vmem:[%s771_s3 + $0x68] sm:$0xff] }
   0x8   :  { %345 = vmatprep.subr.mxu0 %v55_v7  ;;  %133 = vmatprep.mubr.f32.mxu0 %v67_v16  ;;  %v34_v23 = vld [vmem:[%s769_s1 + $0x38] sm:$0xff]  ;;  %v49_v24 = vld [vmem:[%s769_s1 + $0xb0] sm:$0xff]  ;;  %v153_v25 = vld [vmem:[%s771_s3 + $0x60] sm:$0xff] }
   0x9   :  { %346 = vmatpush3.msra.mxu0 %v39_v8  ;;  %411 = vmatpush3.msra.mxu1 %v155_v19  ;;  %v33_v26 = vld [vmem:[%s769_s1 + $0x30] sm:$0xff]  ;;  %v48_v27 = vld [vmem:[%s769_s1 + $0xa8] sm:$0xff]  ;;  %v152_v28 = vld [vmem:[%s771_s3 + $0x58] sm:$0xff] }
   0xa   :  { %347 = vmatprep.subr.mxu0 %v54_v9  ;;  %412 = vmatprep.subr.mxu1 %v481_v3  ;;  %v32_v29 = vld [vmem:[%s769_s1 + $0x28] sm:$0xff]  ;;  %v47_v30 = vld [vmem:[%s769_s1 + $0xa0] sm:$0xff]  ;;  %v151_v31 = vld [vmem:[%s771_s3 + $0x50] sm:$0xff] }
   0xb   :  { %348 = vmatpush3.msra.mxu0 %v38_v10  ;;  %413 = vmatpush3.msra.mxu1 %v154_v22  ;;  %v31_v32 = vld [vmem:[%s769_s1 + $0x20] sm:$0xff]  ;;  %v46_v33 = vld [vmem:[%s769_s1 + $0x98] sm:$0xff]  ;;  %v150_v34 = vld [vmem:[%s771_s3 + $0x48] sm:$0xff] }
   0xc   :  { %349 = vmatprep.subr.mxu0 %v53_v11  ;;  %414 = vmatprep.subr.mxu1 %v481_v3  ;;  %v30_v35 = vld [vmem:[%s769_s1 + $0x18] sm:$0xff]  ;;  %v45_v36 = vld [vmem:[%s769_s1 + $0x90] sm:$0xff]  ;;  %v149_v37 = vld [vmem:[%s771_s3 + $0x40] sm:$0xff] }
   0xd   :  { %350 = vmatpush3.msra.mxu0 %v37_v12  ;;  %415 = vmatpush3.msra.mxu1 %v153_v25  ;;  %v29_v38 = vld [vmem:[%s769_s1 + $0x10] sm:$0xff]  ;;  %v44_v39 = vld [vmem:[%s769_s1 + $0x88] sm:$0xff]  ;;  %v148_v40 = vld [vmem:[%s771_s3 + $0x38] sm:$0xff] }
   0xe   :  { %351 = vmatprep.subr.mxu0 %v52_v13  ;;  %416 = vmatprep.subr.mxu1 %v481_v3  ;;  %v28_v41 = vld [vmem:[%s769_s1 + $0x8] sm:$0xff]  ;;  %v43_v42 = vld [vmem:[%s769_s1 + $0x80] sm:$0xff]  ;;  %v147_v43 = vld [vmem:[%s771_s3 + $0x30] sm:$0xff] }
   0xf   :  { %352 = vmatpush3.msra.mxu0 %v36_v15  ;;  %417 = vmatpush3.msra.mxu1 %v152_v28  ;;  %v27_v44 = vld [vmem:[%s769_s1] sm:$0xff]  ;;  %v146_v45 = vld [vmem:[%s771_s3 + $0x28] sm:$0xff]  ;;  %v144_v47 = vld [vmem:[%s771_s3 + $0x18] sm:$0xff] }
  0x10   :  { %353 = vmatprep.subr.mxu0 %v51_v18  ;;  %418 = vmatprep.subr.mxu1 %v481_v3  ;;  %v145_v46 = vld [vmem:[%s771_s3 + $0x20] sm:$0xff]  ;;  %v143_v48 = vld [vmem:[%s771_s3 + $0x10] sm:$0xff]  ;;  %v142_v49 = vld [vmem:[%s771_s3 + $0x8] sm:$0xff] }
  0x11   :  { %354 = vmatpush3.msra.mxu0 %v35_v20  ;;  %419 = vmatpush3.msra.mxu1 %v151_v31  ;;  %v141_v50 = vld [vmem:[%s771_s3] sm:$0xff]  ;;  %v251_v51 = vld [vmem:[%s772_s5 + $0x78] sm:$0xff]  ;;  %v250_v52 = vld [vmem:[%s772_s5 + $0x70] sm:$0xff] }
  0x12   :  { %355 = vmatprep.subr.mxu0 %v50_v21  ;;  %420 = vmatprep.subr.mxu1 %v481_v3  ;;  %v249_v53 = vld [vmem:[%s772_s5 + $0x68] sm:$0xff]  ;;  %v248_v54 = vld [vmem:[%s772_s5 + $0x60] sm:$0xff]  ;;  %v247_v55 = vld [vmem:[%s772_s5 + $0x58] sm:$0xff] }
  0x13   :  { %356 = vmatpush3.msra.mxu0 %v34_v23  ;;  %421 = vmatpush3.msra.mxu1 %v150_v34  ;;  %v246_v56 = vld [vmem:[%s772_s5 + $0x50] sm:$0xff]  ;;  %v245_v57 = vld [vmem:[%s772_s5 + $0x48] sm:$0xff]  ;;  %v244_v58 = vld [vmem:[%s772_s5 + $0x40] sm:$0xff] }
  0x14   :  { %357 = vmatprep.subr.mxu0 %v49_v24  ;;  %422 = vmatprep.subr.mxu1 %v481_v3  ;;  %v243_v59 = vld [vmem:[%s772_s5 + $0x38] sm:$0xff]  ;;  %v242_v60 = vld [vmem:[%s772_s5 + $0x30] sm:$0xff]  ;;  %v241_v61 = vld [vmem:[%s772_s5 + $0x28] sm:$0xff] }
  0x15   :  { %358 = vmatpush3.msra.mxu0 %v33_v26  ;;  %423 = vmatpush3.msra.mxu1 %v149_v37  ;;  %v240_v62 = vld [vmem:[%s772_s5 + $0x20] sm:$0xff]  ;;  %v239_v7 = vld [vmem:[%s772_s5 + $0x18] sm:$0xff]  ;;  %v238_v8 = vld [vmem:[%s772_s5 + $0x10] sm:$0xff] }
  0x16   :  { %359 = vmatprep.subr.mxu0 %v48_v27  ;;  %424 = vmatprep.subr.mxu1 %v481_v3  ;;  %v336_v0 = vld [vmem:[%s773_s2] ss:$0 sm:$0xff]  ;;  %v237_v9 = vld [vmem:[%s772_s5 + $0x8] sm:$0xff] }
  0x17   :  { %360 = vmatpush3.msra.mxu0 %v32_v29  ;;  %425 = vmatpush3.msra.mxu1 %v148_v40  ;;  %v236_v10 = vld [vmem:[%s772_s5] sm:$0xff] }
  0x18   :  { %361 = vmatprep.subr.mxu0 %v47_v30  ;;  %426 = vmatprep.subr.mxu1 %v481_v3  ;;  %v337_v11 = vld [vmem:[%s774_s4] ss:$0 sm:$0xff] }
  0x19   :  { %362 = vmatpush3.msra.mxu0 %v31_v32  ;;  %427 = vmatpush3.msra.mxu1 %v147_v43  ;;  %v338_v17 = vld [vmem:[%s775_s6] ss:$0 sm:$0xff] }
  0x1a   :  { %363 = vmatprep.subr.mxu0 %v46_v33  ;;  %428 = vmatprep.subr.mxu1 %v481_v3 }
  0x1b   :  { %364 = vmatpush3.msra.mxu0 %v30_v35  ;;  %429 = vmatpush3.msra.mxu1 %v146_v45 }
  0x1c   :  { %365 = vmatprep.subr.mxu0 %v45_v36  ;;  %430 = vmatprep.subr.mxu1 %v481_v3 }
  0x1d   :  { %366 = vmatpush3.msra.mxu0 %v29_v38  ;;  %431 = vmatpush3.msra.mxu1 %v145_v46 }
  0x1e   :  { %367 = vmatprep.subr.mxu0 %v44_v39  ;;  %432 = vmatprep.subr.mxu1 %v481_v3 }
  0x1f   :  { %368 = vmatpush3.msra.mxu0 %v28_v41  ;;  %433 = vmatpush3.msra.mxu1 %v144_v47 }
  0x20   :  { %369 = vmatprep.subr.mxu0 %v43_v42  ;;  %434 = vmatprep.subr.mxu1 %v481_v3 }
  0x21   :  { %370 = vmatpush3.msra.mxu0 %v27_v44  ;;  %435 = vmatpush3.msra.mxu1 %v143_v48 }
  0x22   :  { %134 = vmatmul.mubr.f32.vlgmr.msra.gmra.mxu0 %v566_v14  ;;  %443 = vmatprep.subr.mxu0 %v481_v3 }
  0x23   :  { %436 = vmatprep.subr.mxu1 %v481_v3  ;;  %475 = vmatprep.mubr.msk.f32.mxu0 %vm482_vm0, %v481_v3 }
  0x24   :  { %437 = vmatpush3.msra.mxu1 %v142_v49  ;;  %444 = vmatpush3.msra.mxu0 %v251_v51 }
  0x25   :  { %438 = vmatprep.subr.mxu1 %v481_v3  ;;  %445 = vmatprep.subr.mxu0 %v481_v3 }
  0x26   :  { %439 = vmatpush3.msra.mxu1 %v141_v50  ;;  %446 = vmatpush3.msra.mxu0 %v250_v52 }
  0x27   :  { %447 = vmatprep.subr.mxu0 %v481_v3 }
  0x28   :  { %448 = vmatpush3.msra.mxu0 %v249_v53 }
  0x29   :  { %449 = vmatprep.subr.mxu0 %v481_v3 }
  0x2a   :  { %450 = vmatpush3.msra.mxu0 %v248_v54 }
  0x2b   :  { %451 = vmatprep.subr.mxu0 %v481_v3 }
  0x2c   :  { %452 = vmatpush3.msra.mxu0 %v247_v55 }
  0x2d   :  { %453 = vmatprep.subr.mxu0 %v481_v3 }
  0x2e   :  { %454 = vmatpush3.msra.mxu0 %v246_v56 }
  0x2f   :  { %455 = vmatprep.subr.mxu0 %v481_v3 }
  0x30   :  { %456 = vmatpush3.msra.mxu0 %v245_v57 }
  0x31   :  { %457 = vmatprep.subr.mxu0 %v481_v3 }
  0x32   :  { %458 = vmatpush3.msra.mxu0 %v244_v58 }
  0x33   :  { %459 = vmatprep.subr.mxu0 %v481_v3 }
  0x34   :  { %460 = vmatpush3.msra.mxu0 %v243_v59 }
  0x35   :  { %461 = vmatprep.subr.mxu0 %v481_v3 }
  0x36   :  { %462 = vmatpush3.msra.mxu0 %v242_v60 }
  0x37   :  { %463 = vmatprep.subr.mxu0 %v481_v3 }
  0x38   :  { %464 = vmatpush3.msra.mxu0 %v241_v61 }
  0x39   :  { %465 = vmatprep.subr.mxu0 %v481_v3 }
  0x3a   :  { %466 = vmatpush3.msra.mxu0 %v240_v62 }
  0x3b   :  { %467 = vmatprep.subr.mxu0 %v481_v3 }
  0x3c   :  { %468 = vmatpush3.msra.mxu0 %v239_v7 }
  0x3d   :  { %469 = vmatprep.subr.mxu0 %v481_v3 }
  0x3e   :  { %470 = vmatpush3.msra.mxu0 %v238_v8 }
  0x3f   :  { %471 = vmatprep.subr.mxu0 %v481_v3 }
  0x40   :  { %472 = vmatpush3.msra.mxu0 %v237_v9 }
  0x41   :  { %473 = vmatprep.subr.mxu0 %v481_v3 }
  0x42   :  { %474 = vmatpush3.msra.mxu0 %v236_v10 }
  0xe2   :  { %v371_v63 = vpop.f32.mrf.mxu0 }
  0xe4   :  { %v372_v1 = vpop.f32.mrf.mxu0 }
  0xe5   :  { %v373_v2 = vadd.f32 %v372_v1, %v371_v63 }
  0xe7   :  { %v136_v4 = vadd.f32 %v373_v2, %v336_v0 }
  0xe9   :  { %v139_v5 = vmul.f32 0.01, %v136_v4 }
  0xeb   :  { %v140_v6 = vmax.f32 %v136_v4, %v139_v5 }
  0xed   :  { %441 = vmatmul.mubr.f32.vlgmr.msra.gmra.mxu1 %v140_v6 }
 0x1ad   :  { %v230_v12 = vpop.f32.mrf.mxu1 }
 0x1ae   :  { %v231_v13 = vadd.f32 %v337_v11, %v230_v12 }
 0x1af   :  { %v442_v14 = vpop.f32.mrf.mxu1 }
 0x1b0   :  { %v234_v15 = vmul.f32 0.01, %v231_v13 }
 0x1b2   :  { %v235_v16 = vmax.f32 %v231_v13, %v234_v15 }
 0x1b4   :  { %476 = vmatmul.mubr.f32.vlgmr.msra.gmra.mxu0 %v235_v16 }
 0x274   :  { %v318_v3 = vpop.f32.mrf.mxu0 }
 0x275   :  { %v329_v18 = vadd.f32 %v338_v17, %v318_v3 }
 0x276   :  { %v477_v19 = vpop.f32.mrf.mxu0 }
 0x277   :  { %331 = vst.msk [vmem:[%s776_s7] sm:$0xf] %vm330_vm1, %v329_v18 }

</bundles_post_ra>
